<compile_context>
chip_gen: v7x
topology: tpu7x:2x2x1
jax: 0.10.0
libtpu: 0.0.40
codegen_flags: <defaults>
</compile_context>

<pallas_src>
from math import ceil

import jax
import jax.numpy as jnp
from jax.experimental import pallas as pl
from jax.experimental.pallas import tpu as pltpu

_LANE = 128
_SUBLANE = 8
_WIDE_IN_BITS = 64                      # >= this -> batch-major / MXU-select path
_VMEM_LIMIT_BYTES = 40 * 1024 * 1024    # safe on v5e/v6e (128 MiB) and v7x (64 MiB)


# --------------------------------------------------------------------------
# Small helpers
# --------------------------------------------------------------------------
def _round_up(x, m):
    return ((x + m - 1) // m) * m


def _cdiv(a, b):
    return -(-a // b)


def _per_step_target_bytes():
    """Chip-aware streamed-bytes-per-grid-step target (gets double-buffered)."""
    try:
        vmem = int(pltpu.get_tpu_info().vmem_capacity_bytes)
    except Exception:                    # non-TPU / API fallback: be conservative
        vmem = 64 * 1024 * 1024
    # v7x (64 MiB VMEM) -> 4 MiB steps; v5e/v6e (128 MiB) -> 8 MiB steps.
    return min(8 * 1024 * 1024, max(2 * 1024 * 1024, vmem // 16))


def _choose_tiling(batch, bytes_per_row, granule, tile_override=None,
                   min_rows_per_step=512):
    """Near-equal batch tiles (multiples of `granule`).

    Fixes the previous "round the batch up to one huge tile" pad blow-up and
    keeps >= 4 grid steps when the batch is large enough, so dual-TensorCore
    chips (v7x) can shard the 'parallel' grid axis.
    """
    b = _round_up(max(int(batch), 1), granule)
    if tile_override is not None:
        tile = _round_up(int(tile_override), granule)   # validate user tile
    else:
        target_rows = max(granule, _per_step_target_bytes() // max(bytes_per_row, 1))
        n = max(1, _cdiv(b, target_rows))
        n = max(n, min(4, b // max(min_rows_per_step, granule)))   # megacore
        tile = _round_up(_cdiv(b, n), granule)
    n = _cdiv(b, tile)
    return tile, n, n * tile


# --------------------------------------------------------------------------
# Batch-independent constants (hoisted out of the forward pass)
# --------------------------------------------------------------------------
def _fold_lut_coefficients(lut_tpe):
    """softmax(lut_tpe) (16, W) -> (4, W) rows [c0, ca, cb, cab].

    Every soft-LUT feature is affine in (a, b, a*b):
        lut_k = k3 + (k1 - k3)*a + (k2 - k3)*b + (k0 - k1 - k2 + k3)*a*b
    with k3..k0 the bits of the LUT index, so the 16-term contraction folds
    exactly to a 4-coefficient bilinear form.
    """
    w = jax.nn.softmax(lut_tpe.astype(jnp.float32), axis=0)       # (16, W)
    k = jnp.arange(16)
    k0 = (k & 1).astype(jnp.float32)
    k1 = ((k >> 1) & 1).astype(jnp.float32)
    k2 = ((k >> 2) & 1).astype(jnp.float32)
    k3 = ((k >> 3) & 1).astype(jnp.float32)
    fold = jnp.stack([k3, k1 - k3, k2 - k3, k0 - k1 - k2 + k3], axis=0)  # (4,16)
    return fold @ w                                               # (4, W)


def _even_odd_selectors(in_bits, width):
    """(2, in_bits, width) 0/1 matrices: [0] picks even bits, [1] odd bits.

    If in_bits is odd, the last gate's odd column is all-zero, which
    reproduces the reference F.pad(x, (0, 1)) zero padding exactly (b = 0).
    """
    rows = jnp.arange(in_bits)[:, None]
    cols = jnp.arange(width)[None, :]
    even = (rows == 2 * cols).astype(jnp.float32)
    odd = (rows == (2 * cols + 1)).astype(jnp.float32)
    return jnp.stack([even, odd], axis=0)


# --------------------------------------------------------------------------
# Kernels
# --------------------------------------------------------------------------
def _gate_bilinear(a, b, c0, ca, cb, cab):
    # Folded soft-LUT gate: ~7 VPU ops / element.
    return c0 + ca * a + cb * b + cab * (a * b)


def _wide_kernel(x_ref, sel_ref, coef_ref, out_ref):
    """Batch-major path.  x:(TB,F)  sel:(2,F,W)  coef:(4,W)  out:(TB,W).

    The even/odd deinterleave + compaction is done as two 0/1-selection
    matmuls on the (otherwise idle) MXU.  precision=HIGHEST keeps it exact
    (each selector column contains exactly one 1.0); for in_bits >= ~64 the
    padded MXU work stays hidden under the HBM stream.
    """
    x = x_ref[...]
    hi = jax.lax.Precision.HIGHEST
    a = jnp.dot(x, sel_ref[0], precision=hi, preferred_element_type=jnp.float32)
    b = jnp.dot(x, sel_ref[1], precision=hi, preferred_element_type=jnp.float32)
    out_ref[...] = _gate_bilinear(
        a, b, coef_ref[0:1, :], coef_ref[1:2, :], coef_ref[2:3, :],
        coef_ref[3:4, :]).astype(out_ref.dtype)


def _narrow_kernel(ab_ref, coef_ref, out_ref):
    """Gate-major path.  ab:(2,W,TB) (batch on lanes)  coef:(W,4)  out:(W,TB)."""
    a = ab_ref[0]
    b = ab_ref[1]
    out_ref[...] = _gate_bilinear(
        a, b, coef_ref[:, 0:1], coef_ref[:, 1:2], coef_ref[:, 2:3],
        coef_ref[:, 3:4]).astype(out_ref.dtype)


# --------------------------------------------------------------------------
# Single BinaryTreeLayer forward
# --------------------------------------------------------------------------
def _forward_wide(x, sel, coef, width, tile_override=None):
    b, f = x.shape
    x = x.astype(jnp.float32)
    tile, steps, bp = _choose_tiling(
        b, bytes_per_row=4 * (f + width), granule=_SUBLANE,
        tile_override=tile_override, min_rows_per_step=512)
    if bp != b:
        x = jnp.pad(x, ((0, bp - b), (0, 0)))     # only a few (<= 8*steps) rows
    out = pl.pallas_call(
        _wide_kernel,
        out_shape=jax.ShapeDtypeStruct((bp, width), jnp.float32),
        grid=(steps,),
        in_specs=[
            pl.BlockSpec((tile, f), lambda i: (i, 0)),          # streamed input
            pl.BlockSpec((2, f, width), lambda i: (0, 0, 0)),   # resident selectors
            pl.BlockSpec((4, width), lambda i: (0, 0)),         # resident coeffs
        ],
        out_specs=pl.BlockSpec((tile, width), lambda i: (i, 0)),
        compiler_params=pltpu.CompilerParams(
            dimension_semantics=("parallel",),
            vmem_limit_bytes=_VMEM_LIMIT_BYTES),
    )(x, sel, coef)
    return out[:b] if bp != b else out


def _forward_narrow(x, coef_t, in_bits, width, tile_override=None):
    b = x.shape[0]
    x = x.astype(jnp.float32)
    f_pad = 2 * width                              # even number of input bits
    tile, steps, bp = _choose_tiling(
        b, bytes_per_row=4 * 3 * width, granule=_LANE,
        tile_override=tile_override, min_rows_per_step=1024)
    pad_rows, pad_cols = bp - b, f_pad - in_bits
    if pad_rows or pad_cols:
        x = jnp.pad(x, ((0, pad_rows), (0, pad_cols)))
    # Single restructuring pass (B, 2W) -> (2, W, Bp) with batch on lanes; the
    # odd-bit zero pad and the batch pad are folded into the same copy.
    ab = x.T.reshape(width, 2, bp).transpose(1, 0, 2)
    out = pl.pallas_call(
        _narrow_kernel,
        out_shape=jax.ShapeDtypeStruct((width, bp), jnp.float32),
        grid=(steps,),
        in_specs=[
            pl.BlockSpec((2, width, tile), lambda i: (0, 0, i)),  # streamed a/b
            pl.BlockSpec((width, 4), lambda i: (0, 0)),           # resident coeffs
        ],
        out_specs=pl.BlockSpec((width, tile), lambda i: (0, i)),
        compiler_params=pltpu.CompilerParams(
            dimension_semantics=("parallel",),
            vmem_limit_bytes=_VMEM_LIMIT_BYTES),
    )(ab, coef_t)
    return out[:, :b] if bp != b else out


class BinaryTreeLayerPallas:
    """Pallas TPU forward pass for BinaryTreeLayer(in_bits)."""

    def __init__(self, in_bits: int, key, tile_override=None):
        self.in_bits = int(in_bits)
        self.width = ceil(self.in_bits / 2)
        # One Gate per output bit; Gate.__init__ uses torch.rand(16, 1).
        self.lut_tpe = jax.random.uniform(key, (16, self.width), dtype=jnp.float32)
        # Hoisted, batch-independent constants (review item).
        self.coef = _fold_lut_coefficients(self.lut_tpe)           # (4, W)
        self.coef_t = self.coef.T                                  # (W, 4)
        self.sel = _even_odd_selectors(self.in_bits, self.width)   # (2, F, W)
        self.tile_override = tile_override
        self.use_wide_path = self.in_bits >= _WIDE_IN_BITS

    def __call__(self, x, gate_major_output=False):
        # x: (B, in_bits) -> (B, W)   (or (W, B) when gate_major_output=True)
        if self.use_wide_path:
            out = _forward_wide(x, self.sel, self.coef, self.width,
                                self.tile_override)
            return out.T if gate_major_output else out
        out_gm = _forward_narrow(x, self.coef_t, self.in_bits, self.width,
                                 self.tile_override)
        return out_gm if gate_major_output else out_gm.T


# --------------------------------------------------------------------------
# Fused multi-level tree network (activations resident in VMEM)
# --------------------------------------------------------------------------
def _make_fused_kernel(num_levels):
    def kernel(*refs):
        x_ref = refs[0]
        out_ref = refs[-1]
        hi = jax.lax.Precision.HIGHEST
        act = x_ref[...]
        for lvl in range(num_levels):              # static unroll over levels
            sel_ref = refs[1 + 2 * lvl]
            coef_ref = refs[2 + 2 * lvl]
            a = jnp.dot(act, sel_ref[0], precision=hi,
                        preferred_element_type=jnp.float32)
            b = jnp.dot(act, sel_ref[1], precision=hi,
                        preferred_element_type=jnp.float32)
            act = _gate_bilinear(a, b, coef_ref[0:1, :], coef_ref[1:2, :],
                                 coef_ref[2:3, :], coef_ref[3:4, :])
        out_ref[...] = act.astype(out_ref.dtype)
    return kernel


class BinaryTreeNetworkPallas:
    """Stack of BinaryTreeLayers fused into ONE pallas_call.

    Activations never round-trip through HBM between levels: one read of the
    input slab + one write of the final output per batch tile.
    """
    # TODO(synk): for very narrow inner levels the padded MXU selection can
    # exceed the HBM bound; a lane-resident (stride-2^level, roll-based)
    # formulation would remove that residual MXU work.

    def __init__(self, in_bits: int, num_levels: int, key, tile_override=None):
        keys = jax.random.split(key, num_levels)
        self.layers = []
        bits = int(in_bits)
        for lvl in range(num_levels):
            layer = BinaryTreeLayerPallas(bits, keys[lvl])
            self.layers.append(layer)
            bits = layer.width
        self.in_bits = int(in_bits)
        self.out_bits = bits
        self.tile_override = tile_override

    def __call__(self, x):
        b, f = x.shape
        x = x.astype(jnp.float32)
        tile, steps, bp = _choose_tiling(
            b, bytes_per_row=4 * (f + self.out_bits), granule=_SUBLANE,
            tile_override=self.tile_override, min_rows_per_step=512)
        if bp != b:
            x = jnp.pad(x, ((0, bp - b), (0, 0)))

        in_specs = [pl.BlockSpec((tile, f), lambda i: (i, 0))]
        operands = [x]
        for layer in self.layers:                  # tiny resident constants
            in_specs.append(pl.BlockSpec((2, layer.in_bits, layer.width),
                                         lambda i: (0, 0, 0)))
            in_specs.append(pl.BlockSpec((4, layer.width), lambda i: (0, 0)))
            operands.extend([layer.sel, layer.coef])

        out = pl.pallas_call(
            _make_fused_kernel(len(self.layers)),
            out_shape=jax.ShapeDtypeStruct((bp, self.out_bits), jnp.float32),
            grid=(steps,),
            in_specs=in_specs,
            out_specs=pl.BlockSpec((tile, self.out_bits), lambda i: (i, 0)),
            compiler_params=pltpu.CompilerParams(
                dimension_semantics=("parallel",),
                vmem_limit_bytes=_VMEM_LIMIT_BYTES),
        )(*operands)
        return out[:b] if bp != b else out


# --------------------------------------------------------------------------
# Pure-JAX reference (unfolded, mirrors the PyTorch forward) + self-test
# --------------------------------------------------------------------------
def _reference_forward(x, lut_tpe, in_bits):
    x = x.astype(jnp.float32)
    if in_bits % 2 == 1:
        x = jnp.pad(x, ((0, 0), (0, 1)))
    a = x[:, ::2]
    b = x[:, 1::2]
    w = jax.nn.softmax(lut_tpe, axis=0)                           # (16, W)
    ab, anb = a * b, a * (1 - b)
    nab, nanb = (1 - a) * b, (1 - a) * (1 - b)
    luts = jnp.stack([
        jnp.zeros_like(ab), ab, anb, ab + anb,
        nab, ab + nab, anb + nab, ab + anb + nab,
        nanb, ab + nanb, anb + nanb, ab + anb + nanb,
        nab + nanb, ab + nab + nanb, anb + nab + nanb,
        jnp.ones_like(ab),
    ], axis=0)                                                    # (16, B, W)
    return jnp.einsum("kbw,kw->bw", luts, w)


if __name__ == "__main__":
    key = jax.random.PRNGKey(0)
    k1, k2, k3, k4, k5, k6, k7, k8 = jax.random.split(key, 8)

    # Case 1: narrow path, odd in_bits (zero-column pad semantics), tiny batch.
    batch, in_bits = 8, 9
    layer = BinaryTreeLayerPallas(in_bits, k1)
    x = jax.random.uniform(k2, (batch, in_bits), dtype=jnp.float32)
    out = jax.block_until_ready(layer(x))
    ref = _reference_forward(x, layer.lut_tpe, in_bits)
    assert out.shape == (batch, layer.width)
    assert jnp.allclose(out, ref, atol=1e-5, rtol=1e-5), "case 1 mismatch"
    out_gm = jax.block_until_ready(layer(x, gate_major_output=True))
    assert out_gm.shape == (layer.width, batch)
    assert jnp.allclose(out_gm.T, ref, atol=1e-5, rtol=1e-5), "case 1 gm mismatch"

    # Case 2: narrow path, batch not a multiple of the lane tile
    # (multi-step pipelined grid + minimal batch padding/slicing).
    batch2, in_bits2 = 300, 16
    layer2 = BinaryTreeLayerPallas(in_bits2, k3, tile_override=128)
    x2 = jax.random.uniform(k4, (batch2, in_bits2), dtype=jnp.float32)
    out2 = jax.block_until_ready(layer2(x2))
    ref2 = _reference_forward(x2, layer2.lut_tpe, in_bits2)
    assert out2.shape == (batch2, layer2.width)
    assert jnp.allclose(out2, ref2, atol=1e-5, rtol=1e-5), "case 2 mismatch"

    # Case 3: wide path (batch-major, in-kernel MXU deinterleave, no wrapper
    # copies), multi-step grid with a ragged batch.
    batch3, in_bits3 = 100, 160
    layer3 = BinaryTreeLayerPallas(in_bits3, k5, tile_override=32)
    x3 = jax.random.uniform(k6, (batch3, in_bits3), dtype=jnp.float32)
    out3 = jax.block_until_ready(layer3(x3))
    ref3 = _reference_forward(x3, layer3.lut_tpe, in_bits3)
    assert out3.shape == (batch3, layer3.width)
    assert jnp.allclose(out3, ref3, atol=1e-5, rtol=1e-5), "case 3 mismatch"

    # Case 4: fused 3-level tree network (activations resident in VMEM).
    batch4, in_bits4 = 200, 12
    net = BinaryTreeNetworkPallas(in_bits4, num_levels=3, key=k7, tile_override=64)
    x4 = jax.random.uniform(k8, (batch4, in_bits4), dtype=jnp.float32)
    out4 = jax.block_until_ready(net(x4))
    ref4 = x4
    for lyr in net.layers:
        ref4 = _reference_forward(ref4, lyr.lut_tpe, lyr.in_bits)
    assert out4.shape == (batch4, net.out_bits)
    assert jnp.allclose(out4, ref4, atol=1e-5, rtol=1e-5), "case 4 mismatch"

    print("KERNEL_OK")
</pallas_src>

<mosaic_0001>
module attributes {stable_mosaic.version = 11 : i64} {
  func.func @_narrow_kernel(%arg0: i32, %arg1: memref<2x5x128xf32, #tpu.memory_space<vmem>>, %arg2: memref<5x4xf32, #tpu.memory_space<vmem>>, %arg3: memref<5x128xf32, #tpu.memory_space<vmem>>) attributes {dimension_semantics = [#tpu.dimension_semantics<parallel>], iteration_bounds = array<i64: 1>, scalar_prefetch = 0 : i64, scratch_operands = 0 : i64, tpu.core_type = #tpu.core_type<tc>, window_params = [{transform_indices = @transform_0, window_bounds = array<i64: 2, 5, 128>}, {pipeline_mode = #tpu.pipeline_mode<synchronous>, transform_indices = @transform_1, window_bounds = array<i64: 5, 4>}, {transform_indices = @transform_2, window_bounds = array<i64: 5, 128>}]} {
    %c0 = arith.constant 0 : index
    %c0_0 = arith.constant 0 : index
    %c0_1 = arith.constant 0 : index
    %0 = vector.load %arg1[%c0, %c0_0, %c0_1] : memref<2x5x128xf32, #tpu.memory_space<vmem>>, vector<1x5x128xf32>
    %1 = vector.shape_cast %0 : vector<1x5x128xf32> to vector<5x128xf32>
    %c1 = arith.constant 1 : index
    %c0_2 = arith.constant 0 : index
    %c0_3 = arith.constant 0 : index
    %2 = vector.load %arg1[%c1, %c0_2, %c0_3] : memref<2x5x128xf32, #tpu.memory_space<vmem>>, vector<1x5x128xf32>
    %3 = vector.shape_cast %2 : vector<1x5x128xf32> to vector<5x128xf32>
    %c0_4 = arith.constant 0 : index
    %c0_5 = arith.constant 0 : index
    %4 = vector.load %arg2[%c0_4, %c0_5] : memref<5x4xf32, #tpu.memory_space<vmem>>, vector<5x1xf32>
    %c0_6 = arith.constant 0 : index
    %c1_7 = arith.constant 1 : index
    %5 = vector.load %arg2[%c0_6, %c1_7] : memref<5x4xf32, #tpu.memory_space<vmem>>, vector<5x1xf32>
    %c0_8 = arith.constant 0 : index
    %c2 = arith.constant 2 : index
    %6 = vector.load %arg2[%c0_8, %c2] : memref<5x4xf32, #tpu.memory_space<vmem>>, vector<5x1xf32>
    %c0_9 = arith.constant 0 : index
    %c3 = arith.constant 3 : index
    %7 = vector.load %arg2[%c0_9, %c3] : memref<5x4xf32, #tpu.memory_space<vmem>>, vector<5x1xf32>
    %8 = vector.broadcast %5 : vector<5x1xf32> to vector<5x128xf32>
    %9 = arith.mulf %8, %1 : vector<5x128xf32>
    %10 = vector.broadcast %4 : vector<5x1xf32> to vector<5x128xf32>
    %11 = arith.addf %10, %9 : vector<5x128xf32>
    %12 = vector.broadcast %6 : vector<5x1xf32> to vector<5x128xf32>
    %13 = arith.mulf %12, %3 : vector<5x128xf32>
    %14 = arith.addf %11, %13 : vector<5x128xf32>
    %15 = arith.mulf %1, %3 : vector<5x128xf32>
    %16 = vector.broadcast %7 : vector<5x1xf32> to vector<5x128xf32>
    %17 = arith.mulf %16, %15 : vector<5x128xf32>
    %18 = arith.addf %14, %17 : vector<5x128xf32>
    %c0_10 = arith.constant 0 : index
    %c0_11 = arith.constant 0 : index
    %19 = vector.load %arg3[%c0_10, %c0_11] : memref<5x128xf32, #tpu.memory_space<vmem>>, vector<5x128xf32>
    tpu.vector_store %arg3[%c0_10, %c0_11], %18 {strides = array<i32>} : memref<5x128xf32, #tpu.memory_space<vmem>>, vector<5x128xf32>,
    return
  }
  func.func @transform_0(%arg0: i32) -> (i32, i32, i32) {
    %c0_i32 = arith.constant 0 : i32
    %c0_i32_0 = arith.constant 0 : i32
    %c0_i32_1 = arith.constant 0 : i32
    return %c0_i32, %c0_i32_0, %arg0 : i32, i32, i32
  }
  func.func @transform_1(%arg0: i32) -> (i32, i32) {
    %c0_i32 = arith.constant 0 : i32
    %c0_i32_0 = arith.constant 0 : i32
    %c0_i32_1 = arith.constant 0 : i32
    return %c0_i32, %c0_i32_0 : i32, i32
  }
  func.func @transform_2(%arg0: i32) -> (i32, i32) {
    %c0_i32 = arith.constant 0 : i32
    %c0_i32_0 = arith.constant 0 : i32
    return %c0_i32, %arg0 : i32, i32
  }
}

</mosaic_0001>

<bundles_post_ra>
// kernel: tpu_custom_call.1
= control target key start
LH: loop header
LB: loop body
LE: loop exit
PB: predicated region body
PF: predicated region fallthrough
CT: control target
= control target key end

     0   :  { %v90_v1 = vmov 1   ;;  %v91_v2 = vmov 2   ;;  %s131_s0 = inlined_call_operand.vmem [shape: f32[2,5,128], index: 0, kind: input, shape index: {}]   ;;  %s132_s1 = inlined_call_operand.vmem [shape: f32[5,4], index: 1, kind: input, shape index: {}]   ;;  %s133_s2 = inlined_call_operand.hbm [shape: f32[5,128], index: 2, kind: output, shape index: {}]  }
   0x1   :  { %v15_v0 = vld [vmem:[%s132_s1] sm:$0x1f]  ;;  %61 = vset.pattern.permute.xlu0 %v90_v1  ;;  %63 = vset.pattern.permute.xlu1 %v91_v2 }
   0x2   :  { %7 = vsyncpa [#allocation3], 0  ;;  %18 = vperm.xlu0 %61, %v15_v0   ;;  %28 = vperm.xlu1 %63, %v15_v0   ;;  %v92_v3 = vmov 0   ;;  %v93_v4 = vmov 3   ;;  %v12_v7 = vld [vmem:[%s131_s0] sm:$0x1f] }
   0x3   :  { %v55_v8 = vld [vmem:[%s131_s0 + $0x8] sm:$0x1f]  ;;  %s94_s14 = smov [#allocation2]  }
   0x4   :  { %v33_v9 = vmul.f32 %v55_v8, %v12_v7  ;;  %s47_s15 = sshll.u32 %s94_s14, 4  ;;  %s48_s15 = int_to_ptr.vmem [resolvable:$true] %s47_s15 }
   0x5   :  { %s66_s16 = scalar_lea.vmem %s48_s15, 128  ;;  %p71_p1 = scmp.lt.s32.totalorder %s48_s15, %s48_s15 }
   0x6   :  { %62 = vset.pattern.permute.xlu0 %v92_v3  ;;  %64 = vset.pattern.permute.xlu1 %v93_v4  ;;  %p67_p0 = scmp.ne.s32.totalorder %s48_s15, %s66_s16  ;;  %p72_p2 = scmp.lt.s32.totalorder %s66_s16, %s66_s16 }
   0x7   :  { %23 = vperm.xlu0 %62, %v15_v0   ;;  %35 = vperm.xlu1 %64, %v15_v0  }
   0x8   :  { %p73_p3 = por %p72_p2, %p71_p1 }
   0xa   :  { %p74_p4 = pnand %p73_p3, %p67_p0 }
   0xb   :  { %65 = vset.pattern.permute.xlu0 %v93_v4 }
  0x81   :  { %v19_v5 = vpop.permute.xlu0 %18  ;;  %v29_v6 = vpop.permute.xlu1 %28 }
  0x82   :  { %v21_v10 = vmul.f32 %v19_v5, %v12_v7  ;;  %v31_v13 = vmul.f32 %v55_v8, %v29_v6 }
  0x86   :  { %v24_v11 = vpop.permute.xlu0 %23  ;;  %v36_v12 = vpop.permute.xlu1 %35 }
  0x87   :  { %v26_v14 = vadd.f32 %v24_v11, %v21_v10  ;;  %v38_v15 = vmul.f32 %v36_v12, %v33_v9 }
  0x89   :  { %v32_v16 = vadd.f32 %v31_v13, %v26_v14 }
  0x8b   :  { %v39_v17 = vadd.f32 %v38_v15, %v32_v16 }
  0x8d   :  { %40 = vst [vmem:[#allocation2] sm:$0x1f] %v39_v17 }
  0x8e   :  { %77 = shalt.err (!%p74_p4)
}
  0x8f   :  { %s78_s18 = scalar_lea.hbm %s133_s2, 128 }
  0x90   :  { %p79_p5 = scmp.ne.s32.totalorder %s133_s2, %s78_s18  ;;  %p82_p6 = scmp.lt.u32.totalorder %s78_s18, %s133_s2 }
  0x92   :  { %p84_p7 = pnand %p82_p6, %p79_p5 }
  0x94   :  { %87 = shalt.err (!%p84_p7)
}
  0x95   :  { %50 = dma.vmem_to_hbm [thread:$0]  %s48_s15, 128, %s133_s2, [#allocation3]  }
  0x96   :  { %88 = dma.done.wait [#allocation3], 128  }
  0x97   :  { %89 = vsyncadd [#allocation3], 4294967168 }
  0x98   :  { %54 = vsyncpa [#allocation3], 1 }

</bundles_post_ra>
